<compile_context>
chip_gen: v5e
topology: v5e:2x2
jax: 0.10.0
libtpu: 0.0.40
codegen_flags: <defaults>
</compile_context>

<pallas_src>
import jax
import jax.numpy as jnp
from jax.experimental import pallas as pl
from jax.experimental.pallas import tpu as pltpu


def _reduce_chans_kernel(x_ref, w_ref, b_ref, o_ref):
    # x_ref: (TB, Cin, THW)  w_ref: (Cout, Cin)  b_ref: (Cout, 1)  o_ref: (TB, Cout, THW)
    w = w_ref[...]
    bcol = b_ref[...]                                  # (Cout, 1), f32
    for t in range(x_ref.shape[0]):                    # static unroll, TB <= 16
        acc = jnp.dot(w, x_ref[t], preferred_element_type=jnp.float32)
        o_ref[t] = (acc + bcol).astype(o_ref.dtype)


def _largest_divisor_leq(n, cap):
    for d in range(min(n, cap), 0, -1):
        if n % d == 0:
            return d
    return 1


def reduce_chans_pallas(x, weight, bias):
    """x: (b, f, Cin, H, W); weight: (Cout, Cin, 1, 1); bias: (Cout,).

    Returns (b, f, Cout, H, W), matching nn.Conv2d(dim1, dim2, kernel_size=1)
    applied to x.view(-1, Cin, H, W) then reshaped back.
    """
    b, f, cin, h, w = x.shape
    cout = weight.shape[0]
    bf = b * f
    hw = h * w
    itemsize = jnp.dtype(x.dtype).itemsize

    # Native NCHW: only flatten frames and spatial dims (no transpose, no pad).
    x3d = x.reshape(bf, cin, hw)
    # Deliberate choice: compute in x's dtype with f32 accumulation + f32 bias.
    w2d = weight.reshape(cout, cin).astype(x.dtype)     # (Cout, Cin), resident
    b2d = bias.reshape(cout, 1).astype(jnp.float32)     # (Cout, 1),   resident

    # ---- tile selection (byte-budget driven) --------------------------------
    # Per-step X+Y payload target; double-buffered ~2x this stays well under the
    # smallest scoped-VMEM default across v5e/v6e/v7x.
    step_budget = 6 * 1024 * 1024

    # 1) spatial tile: prefer the full row (one contiguous DMA per frame,
    #    no ragged tail); otherwise the largest 128-multiple that fits TB=1.
    if (cin + cout) * hw * itemsize <= step_budget or hw <= 128:
        thw = hw                                        # == full dim, always legal
    else:
        thw = (step_budget // ((cin + cout) * itemsize) // 128) * 128
        thw = max(128, thw)                             # 128-multiple, < hw here
    n_hw = pl.cdiv(hw, thw)                             # trailing block clipped by Pallas

    # 2) frame tile: fill the budget with whole frames (cap static unroll at 16).
    per_frame = (cin + cout) * thw * itemsize
    tb_max = max(1, min(bf, 16, step_budget // max(per_frame, 1)))
    if n_hw == 1 and bf >= 2:
        # keep >= 2 grid steps so v7x's 2 TensorCores both get work
        tb_max = min(tb_max, max(1, bf // 2))
    tb = _largest_divisor_leq(bf, tb_max)               # even frame split, no clipping
    n_bf = bf // tb

    grid = (n_bf, n_hw)

    flops = 2 * bf * hw * cin * cout
    bytes_accessed = (
        x3d.size * itemsize                              # read X
        + bf * cout * hw * itemsize                      # write Y
        + w2d.size * itemsize                            # read W
        + b2d.size * 4                                   # read bias
    )

    out = pl.pallas_call(
        _reduce_chans_kernel,
        out_shape=jax.ShapeDtypeStruct((bf, cout, hw), x.dtype),
        grid_spec=pltpu.PrefetchScalarGridSpec(
            num_scalar_prefetch=0,
            grid=grid,
            in_specs=[
                # X: (TB, Cin, THW) — frames blocked, spatial in lanes.
                pl.BlockSpec((tb, cin, thw), lambda i, j: (i, 0, j)),
                # W: resident, full (Cout, Cin).
                pl.BlockSpec((cout, cin), lambda i, j: (0, 0)),
                # bias: resident, full (Cout, 1).
                pl.BlockSpec((cout, 1), lambda i, j: (0, 0)),
            ],
            # Y: (TB, Cout, THW) — lane-dense output tile.
            out_specs=pl.BlockSpec((tb, cout, thw), lambda i, j: (i, 0, j)),
        ),
        compiler_params=pltpu.CompilerParams(
            dimension_semantics=("parallel", "parallel"),
            vmem_limit_bytes=32 * 1024 * 1024,
        ),
        cost_estimate=pl.CostEstimate(
            flops=flops, transcendentals=0, bytes_accessed=bytes_accessed),
    )(x3d, w2d, b2d)

    return out.reshape(b, f, cout, h, w)                 # pure reshape, no transpose


if __name__ == "__main__":
    key = jax.random.PRNGKey(0)
    k_x, k_w, k_b = jax.random.split(key, 3)

    # small shapes consistent with the module's forward
    b, f, dim1, dim2, h, w = 2, 3, 4, 8, 16, 16

    x = jax.random.normal(k_x, (b, f, dim1, h, w), dtype=jnp.float32)
    # deterministic synthetic conv parameters (Conv2d(dim1, dim2, 1) shapes)
    weight = jax.random.normal(k_w, (dim2, dim1, 1, 1), dtype=jnp.float32) * 0.1
    bias = jax.random.normal(k_b, (dim2,), dtype=jnp.float32) * 0.1

    out = reduce_chans_pallas(x, weight, bias)
    out = jax.block_until_ready(out)

    # reference check in plain JAX (1x1 conv == per-pixel channel matmul)
    ref = jnp.einsum("bfchw,oc->bfohw", x, weight.reshape(dim2, dim1)) + bias[
        None, None, :, None, None
    ]
    assert out.shape == (b, f, dim2, h, w)
    assert jnp.allclose(out, ref, atol=1e-5, rtol=1e-5)

    print("KERNEL_OK")
</pallas_src>

<mosaic_0001>
module attributes {stable_mosaic.version = 11 : i64} {
  func.func @_reduce_chans_kernel(%arg0: i32, %arg1: i32, %arg2: memref<3x4x256xf32, #tpu.memory_space<vmem>>, %arg3: memref<8x4xf32, #tpu.memory_space<vmem>>, %arg4: memref<8x1xf32, #tpu.memory_space<vmem>>, %arg5: memref<3x8x256xf32, #tpu.memory_space<vmem>>) attributes {dimension_semantics = [#tpu.dimension_semantics<parallel>, #tpu.dimension_semantics<parallel>], iteration_bounds = array<i64: 2, 1>, scalar_prefetch = 0 : i64, scratch_operands = 0 : i64, tpu.core_type = #tpu.core_type<tc>, window_params = [{transform_indices = @transform_0, window_bounds = array<i64: 3, 4, 256>}, {pipeline_mode = #tpu.pipeline_mode<synchronous>, transform_indices = @transform_1, window_bounds = array<i64: 8, 4>}, {pipeline_mode = #tpu.pipeline_mode<synchronous>, transform_indices = @transform_2, window_bounds = array<i64: 8, 1>}, {transform_indices = @transform_3, window_bounds = array<i64: 3, 8, 256>}]} {
    %c0 = arith.constant 0 : index
    %c0_0 = arith.constant 0 : index
    %0 = vector.load %arg3[%c0, %c0_0] : memref<8x4xf32, #tpu.memory_space<vmem>>, vector<8x4xf32>
    %c0_1 = arith.constant 0 : index
    %c0_2 = arith.constant 0 : index
    %1 = vector.load %arg4[%c0_1, %c0_2] : memref<8x1xf32, #tpu.memory_space<vmem>>, vector<8x1xf32>
    %c0_3 = arith.constant 0 : index
    %c0_4 = arith.constant 0 : index
    %c0_5 = arith.constant 0 : index
    %2 = vector.load %arg2[%c0_3, %c0_4, %c0_5] : memref<3x4x256xf32, #tpu.memory_space<vmem>>, vector<1x4x256xf32>
    %3 = vector.shape_cast %2 : vector<1x4x256xf32> to vector<4x256xf32>
    %cst = arith.constant dense<0.000000e+00> : vector<8x256xf32>
    %4 = tpu.matmul %0, %3, %cst {dimension_numbers = #tpu.dot_dimension_numbers<[1], [0], [0], [1], [0, 0, 1, 1], [], []>} : vector<8x4xf32>, vector<4x256xf32>, vector<8x256xf32> -> vector<8x256xf32>
    %5 = vector.broadcast %1 : vector<8x1xf32> to vector<8x256xf32>
    %6 = arith.addf %4, %5 : vector<8x256xf32>
    %c0_6 = arith.constant 0 : index
    %c0_7 = arith.constant 0 : index
    %c0_8 = arith.constant 0 : index
    %7 = vector.load %arg5[%c0_6, %c0_7, %c0_8] : memref<3x8x256xf32, #tpu.memory_space<vmem>>, vector<1x8x256xf32>
    %8 = vector.shape_cast %7 : vector<1x8x256xf32> to vector<8x256xf32>
    %9 = vector.shape_cast %6 : vector<8x256xf32> to vector<1x8x256xf32>
    tpu.vector_store %arg5[%c0_6, %c0_7, %c0_8], %9 {strides = array<i32>} : memref<3x8x256xf32, #tpu.memory_space<vmem>>, vector<1x8x256xf32>,
    %c1 = arith.constant 1 : index
    %c0_9 = arith.constant 0 : index
    %c0_10 = arith.constant 0 : index
    %10 = vector.load %arg2[%c1, %c0_9, %c0_10] : memref<3x4x256xf32, #tpu.memory_space<vmem>>, vector<1x4x256xf32>
    %11 = vector.shape_cast %10 : vector<1x4x256xf32> to vector<4x256xf32>
    %cst_11 = arith.constant dense<0.000000e+00> : vector<8x256xf32>
    %12 = tpu.matmul %0, %11, %cst_11 {dimension_numbers = #tpu.dot_dimension_numbers<[1], [0], [0], [1], [0, 0, 1, 1], [], []>} : vector<8x4xf32>, vector<4x256xf32>, vector<8x256xf32> -> vector<8x256xf32>
    %13 = vector.broadcast %1 : vector<8x1xf32> to vector<8x256xf32>
    %14 = arith.addf %12, %13 : vector<8x256xf32>
    %c1_12 = arith.constant 1 : index
    %c0_13 = arith.constant 0 : index
    %c0_14 = arith.constant 0 : index
    %15 = vector.load %arg5[%c1_12, %c0_13, %c0_14] : memref<3x8x256xf32, #tpu.memory_space<vmem>>, vector<1x8x256xf32>
    %16 = vector.shape_cast %15 : vector<1x8x256xf32> to vector<8x256xf32>
    %17 = vector.shape_cast %14 : vector<8x256xf32> to vector<1x8x256xf32>
    tpu.vector_store %arg5[%c1_12, %c0_13, %c0_14], %17 {strides = array<i32>} : memref<3x8x256xf32, #tpu.memory_space<vmem>>, vector<1x8x256xf32>,
    %c2 = arith.constant 2 : index
    %c0_15 = arith.constant 0 : index
    %c0_16 = arith.constant 0 : index
    %18 = vector.load %arg2[%c2, %c0_15, %c0_16] : memref<3x4x256xf32, #tpu.memory_space<vmem>>, vector<1x4x256xf32>
    %19 = vector.shape_cast %18 : vector<1x4x256xf32> to vector<4x256xf32>
    %cst_17 = arith.constant dense<0.000000e+00> : vector<8x256xf32>
    %20 = tpu.matmul %0, %19, %cst_17 {dimension_numbers = #tpu.dot_dimension_numbers<[1], [0], [0], [1], [0, 0, 1, 1], [], []>} : vector<8x4xf32>, vector<4x256xf32>, vector<8x256xf32> -> vector<8x256xf32>
    %21 = vector.broadcast %1 : vector<8x1xf32> to vector<8x256xf32>
    %22 = arith.addf %20, %21 : vector<8x256xf32>
    %c2_18 = arith.constant 2 : index
    %c0_19 = arith.constant 0 : index
    %c0_20 = arith.constant 0 : index
    %23 = vector.load %arg5[%c2_18, %c0_19, %c0_20] : memref<3x8x256xf32, #tpu.memory_space<vmem>>, vector<1x8x256xf32>
    %24 = vector.shape_cast %23 : vector<1x8x256xf32> to vector<8x256xf32>
    %25 = vector.shape_cast %22 : vector<8x256xf32> to vector<1x8x256xf32>
    tpu.vector_store %arg5[%c2_18, %c0_19, %c0_20], %25 {strides = array<i32>} : memref<3x8x256xf32, #tpu.memory_space<vmem>>, vector<1x8x256xf32>,
    return
  }
  func.func @transform_0(%arg0: i32, %arg1: i32) -> (i32, i32, i32) {
    %c0_i32 = arith.constant 0 : i32
    %c0_i32_0 = arith.constant 0 : i32
    return %arg0, %c0_i32, %arg1 : i32, i32, i32
  }
  func.func @transform_1(%arg0: i32, %arg1: i32) -> (i32, i32) {
    %c0_i32 = arith.constant 0 : i32
    %c0_i32_0 = arith.constant 0 : i32
    %c0_i32_1 = arith.constant 0 : i32
    return %c0_i32, %c0_i32_0 : i32, i32
  }
  func.func @transform_2(%arg0: i32, %arg1: i32) -> (i32, i32) {
    %c0_i32 = arith.constant 0 : i32
    %c0_i32_0 = arith.constant 0 : i32
    %c0_i32_1 = arith.constant 0 : i32
    return %c0_i32, %c0_i32_0 : i32, i32
  }
  func.func @transform_3(%arg0: i32, %arg1: i32) -> (i32, i32, i32) {
    %c0_i32 = arith.constant 0 : i32
    %c0_i32_0 = arith.constant 0 : i32
    return %arg0, %c0_i32, %arg1 : i32, i32, i32
  }
}

</mosaic_0001>

<bundles_post_ra>
// kernel: tpu_custom_call.1
= control target key start
LH: loop header
LB: loop body
LE: loop exit
PB: predicated region body
PF: predicated region fallthrough
CT: control target
= control target key end

     0   :  { %8 = vsyncpa [#allocation3], 0  ;;  %s876_s0 = inlined_call_operand.hbm [shape: f32[6,4,256], index: 0, kind: input, shape index: {}]   ;;  %s877_s1 = inlined_call_operand.vmem [shape: f32[8,4], index: 1, kind: input, shape index: {}]   ;;  %s878_s2 = inlined_call_operand.vmem [shape: f32[8,1], index: 2, kind: input, shape index: {}]   ;;  %s879_s3 = inlined_call_operand.hbm [shape: f32[6,8,256], index: 3, kind: output, shape index: {}]  }
   0x1   :  { %10 = vsyncpa [#allocation3 + $0x1], 0 }
   0x2   :  { %11 = vsyncpa [#allocation4], 0 }
   0x3   :  { %13 = vsyncpa [#allocation4 + $0x1], 0  ;;  %s734_s12 = smov 0   ;;  %s736_s13 = smov 0  }
   0x4   :  { %s738_s14 = smov 0   ;;  %s740_s15 = smov 0  }
   0x5   :  { %s742_s16 = smov 0   ;;  %s744_s17 = smov 0  }
   0x6 LB: > { %s489_s18 = sadd.s32 4294967295, %s707_s17   ;;  %s490_s19 = sadd.s32 4294967294, %s707_s17   ;;  %s707_s17 = sphi %s744_s17, %s19_s17   ;;  %s703_s16 = sphi %s742_s16, %s888_s16   ;;  %s699_s15 = sphi %s740_s15, %s887_s15   ;;  %s695_s14 = sphi %s738_s14, %s886_s14   ;;  %s691_s13 = sphi %s736_s13, %s885_s13   ;;  %s687_s12 = sphi %s734_s12, %s884_s12  }
   0x7   : > { %s31_s20 = sadd.s32 1, %s703_s16  ;;  %s40_s21 = sadd.s32 1, %s695_s14 }
   0x8   : > { %p33_p0 = scmp.ge.s32.totalorder %s31_s20, 2  ;;  %p47_p1 = scmp.ne.s32.totalorder %s695_s14, %s691_s13 }
   0x9   : > { %p48_p2 = scmp.eq.s32.totalorder %s707_s17, 0  ;;  %p53_p3 = scmp.ne.s32.totalorder %s691_s13, %s687_s12 }
   0xa   : > { %s890_s20 = smov (%p33_p0, %s31_s20), 0  ;;  %p54_p5 = scmp.eq.s32.totalorder %s489_s18, 0 }
   0xb   : > { %p775_p4 = por %p48_p2, %p47_p1  ;;  %s35_s23 = ssub.s32 %s703_s16, %s890_s20 }
   0xc   : > { %p121_p6 = scmp.eq.s32.totalorder %s489_s18, 1  ;;  %p38_p7 = scmp.eq.s32.totalorder %s35_s23, 0 }
   0xd   : > { %p781_p8 = por %p54_p5, %p53_p3  ;;  %p127_p10 = scmp.eq.s32.totalorder %s490_s19, 1 }
   0xe   : > { %p785_p9 = por %p121_p6, %p47_p1  ;;  %p492_p12 = scmp.ge.s32.totalorder %s707_s17, 2 }
   0xf   : > { %s790_s26 = scalar_select %p38_p7, %s695_s14, %s40_s21  }
  0x10   : > { %p792_p11 = por %p127_p10, %p53_p3  ;;  %p539_p13 = scmp.lt.s32.totalorder %s707_s17, 2 }
  0x11   : > { %s153_s28 = sand.u32 1, %s695_s14   ;;  %s522_s30 = smul.u32 24, %s703_s16 }
  0x12   : > { %s524_s29 = smul.u32 24, %s153_s28  ;;  %p532_p0 = pnand %p539_p13, %p775_p4 }
  0x13   : > { %s165_s6 = scalar_lea.hbm %s876_s0, %s522_s30  ;;  %p495_p1 = scmp.ge.s32.totalorder %s707_s17, 1 }
  0x14   : > { %s157_s7 = scalar_lea.vmem [#allocation2], %s524_s29  ;;  %s166_s9 = sshll.u32 %s165_s6, 4  ;;  %s167_s9 = int_to_ptr.hbm [resolvable:$true] %s166_s9 }
  0x15   : > { %s168_s8 = sshll.u32 %s157_s7, 4  ;;  %s154_s10 = scalar_lea.sflag [#allocation3], %s153_s28  ;;  %s169_s8 = int_to_ptr.vmem [resolvable:$true] %s168_s8 }
  0x16   : > { %s709_s11 = smov 128   ;;  %s710_s18 = smov 8  }
  0x17   : > { %534 = dma.hbm_to_vmem [thread:$0]  (!%p532_p0), %s167_s9, 384, %s169_s8, %s154_s10, %s709_s11, %s709_s11, %s710_s18  }
  0x18   : > { %p176_p2 = scmp.lt.s32.totalorder %s707_s17, 3 }
  0x1a   : > { %p177_p3 = pnand %p495_p1, %p176_p2 }
  0x1b   : > { %s808_s19 = sand.u32 (!%p177_p3), 1, %s691_s13  }
  0x1c   : > { %180 = sbr.rel (%p177_p3) target bundleno = 193 (0xc1), region = 32  ;;  %s183_s22 = scalar_lea.sflag (!%p177_p3), [#allocation3], %s808_s19 }
  0x1d   : > { %s525_s21 = smul.u32 (!%p177_p3), 24, %s808_s19 }
  0x1f   : > { %s186_s23 = scalar_lea.vmem (!%p177_p3), [#allocation2], %s525_s21 }
  0x21   : > { %678 = dma.done.wait (%p781_p8), %s183_s22, 384  }
  0x22   : > { %680 = vsyncadd (%p781_p8), %s183_s22, 4294966912  ;;  %v711_v0 = vmov 0   ;;  %v216_v1 = vld [vmem:[%s186_s23] sm:$0xff]  ;;  %vm230_vm0 = vcmask 1043456   ;;  %v500_v3 = vld [vmem:[%s186_s23 + $0x8] sm:$0xff]  ;;  %vm226_vm1 = vcmask 31744  }
  0x23   : > { %594 = vset.pattern.permute.xlu0 %v711_v0  ;;  %223 = vst [vmem:[#allocation1] ss:$2 sm:$0xff] %v216_v1  ;;  %v215_v2 = vld [vmem:[%s878_s2] sm:$0xff]  ;;  %v507_v7 = vld [vmem:[%s186_s23 + $0x10] sm:$0xff]  ;;  %s526_s24 = smul.u32 48, %s808_s19  ;;  %s645_s28 = scalar_lea.hbm %s879_s3, 96 }
  0x24   : > { %219 = vperm.xlu0 %594, %v215_v2   ;;  %v214_v4 = vld [vmem:[%s877_s1] sm:$0xff]  ;;  %s523_s6 = smul.u32 48, %s699_s15  ;;  %s384_s15 = scalar_lea.sflag [#allocation4], %s808_s19 }
  0x25   : > { %s209_s5 = scalar_lea.vmem [#allocation5], %s526_s24 }
  0x26   : > { %s398_s9 = scalar_lea.hbm %s879_s3, %s523_s6  ;;  %s399_s10 = sshll.u32 %s209_s5, 4  ;;  %s839_s10 = int_to_ptr.vmem [resolvable:$true] %s399_s10 }
  0x27   : > { %s401_s11 = sshll.u32 %s398_s9, 4  ;;  %s402_s11 = int_to_ptr.hbm [resolvable:$true] %s401_s11 }
  0x28   : > { %s639_s18 = sshra.s32 %s402_s11, 4  ;;  %s640_s18 = int_to_ptr.hbm [resolvable:$true] %s639_s18 }
  0x29   : > { %s641_s21 = scalar_lea.hbm %s640_s18, 48  ;;  %p646_p7 = scmp.lt.s32.totalorder %s640_s18, %s879_s3 }
  0x2a   : > { %v224_v5 = vld.sshfl [vmem:[#allocation1] sm:$0xff pattern:$0x75316420]  ;;  %v225_v6 = vld.sshfl [vmem:[#allocation1 + $0x8] sm:$0xff pattern:$0x75316420]  ;;  %p642_p4 = scmp.ne.s32.totalorder %s640_s18, %s641_s21  ;;  %p647_p8 = scmp.lt.s32.totalorder %s645_s28, %s641_s21 }
  0x2b   : > { %496 = vmatpush.msk.msra.mxu0 %vm230_vm0, %v224_v5  ;;  %498 = vmatpush.msk.msra.mxu1 %vm230_vm0, %v225_v6  ;;  %280 = vst [vmem:[#allocation1] ss:$2 sm:$0xff] %v500_v3 }
  0x2c   : > { %497 = vmatmul.msk.f32.vlgmr.msra.gmra.mxu0 %vm226_vm1, %v214_v4  ;;  %499 = vmatmul.msk.f32.vlgmr.msra.gmra.mxu1 %vm226_vm1, %v214_v4  ;;  %p643_p5 = pnand %p642_p4, %p785_p9  ;;  %p648_p10 = por %p647_p8, %p646_p7 }
  0x2e   : > { %p644_p6 = pneg %p643_p5 }
  0x30   : > { %p649_p13 = pnand %p648_p10, %p644_p6 }
  0x32   : > { %v281_v8 = vld.sshfl [vmem:[#allocation1] sm:$0xff pattern:$0x75316420]  ;;  %v282_v9 = vld.sshfl [vmem:[#allocation1 + $0x8] sm:$0xff pattern:$0x75316420] }
  0x33   : > { %333 = vst [vmem:[#allocation1] ss:$2 sm:$0xff] %v507_v7  ;;  %501 = vmatpush.msk.msra.mxu2 %vm230_vm0, %v281_v8  ;;  %503 = vmatpush.msk.msra.mxu3 %vm230_vm0, %v282_v9 }
  0x34   : > { %502 = vmatmul.msk.f32.vlgmr.msra.gmra.mxu2 %vm226_vm1, %v214_v4  ;;  %504 = vmatmul.msk.f32.vlgmr.msra.gmra.mxu3 %vm226_vm1, %v214_v4 }
  0x3a   : > { %v334_v10 = vld.sshfl [vmem:[#allocation1] sm:$0xff pattern:$0x75316420]  ;;  %v335_v11 = vld.sshfl [vmem:[#allocation1 + $0x8] sm:$0xff pattern:$0x75316420] }
  0x3b   : > { %508 = vmatpush.msk.msrb.mxu0 %vm230_vm0, %v334_v10  ;;  %510 = vmatpush.msk.msrb.mxu1 %vm230_vm0, %v335_v11 }
  0x3c   : > { %509 = vmatmul.msk.f32.vlgmr.msrb.gmra.mxu0 %vm226_vm1, %v214_v4  ;;  %511 = vmatmul.msk.f32.vlgmr.msrb.gmra.mxu1 %vm226_vm1, %v214_v4 }
  0x96   : > { %v220_v12 = vpop.permute.xlu0 %219 }
  0xa9   : > { %v252_v13 = vpop.f32.mrf.mxu0  ;;  %v272_v14 = vpop.f32.mrf.mxu1 }
  0xaa   : > { %v253_v15 = vadd.f32 %v252_v13, %v220_v12  ;;  %v273_v16 = vadd.f32 %v272_v14, %v220_v12 }
  0xac   : > { %275 = vst [vmem:[%s209_s5] sm:$0xff] %v253_v15 }
  0xad   : > { %276 = vst [vmem:[%s209_s5 + $0x8] sm:$0xff] %v273_v16 }
  0xb7   : > { %v304_v17 = vpop.f32.mrf.mxu2  ;;  %v324_v18 = vpop.f32.mrf.mxu3 }
  0xb8   : > { %v305_v19 = vadd.f32 %v304_v17, %v220_v12  ;;  %v325_v20 = vadd.f32 %v324_v18, %v220_v12 }
  0xb9   : > { %v357_v21 = vpop.f32.mrf.mxu0  ;;  %v377_v22 = vpop.f32.mrf.mxu1 }
  0xba   : > { %505 = vst [vmem:[%s209_s5 + $0x10] sm:$0xff] %v305_v19  ;;  %v358_v23 = vadd.f32 %v357_v21, %v220_v12  ;;  %v378_v24 = vadd.f32 %v377_v22, %v220_v12 }
  0xbb   : > { %506 = vst [vmem:[%s209_s5 + $0x18] sm:$0xff] %v325_v20 }
  0xbc   : > { %512 = vst [vmem:[%s209_s5 + $0x20] sm:$0xff] %v358_v23 }
  0xbd   : > { %513 = vst [vmem:[%s209_s5 + $0x28] sm:$0xff] %v378_v24 }
  0xbe   : > { %652 = shalt.err (!%p649_p13)
}
  0xbf   : > { %s712_s19 = smov 256   ;;  %s713_s4 = smov 16  }
  0xc0   : > { %529 = dma.vmem_to_hbm [thread:$0]  (%p785_p9), %s839_s10, 768, %s402_s11, %s384_s15, %s712_s19, %s712_s19, %s713_s4  }
  0xc1 PF: > { %s416_s24 = sand.u32 1, %s687_s12   ;;  %p536_p0 = pnand %p492_p12, %p792_p11 }
  0xc2   : > { %s417_s5 = scalar_lea.sflag [#allocation4], %s416_s24 }
  0xc3   : > { %p537_p1 = pneg %p536_p0 }
  0xc5   : > { %682 = dma.done.wait (%p537_p1), %s417_s5, 768  }
  0xc6   : > { %684 = vsyncadd (%p537_p1), %s417_s5, 4294966528  ;;  %s19_s17 = sadd.s32 1, %s707_s17   ;;  %s884_s12 = smov %s691_s13 }
  0xc7   : > { %p16_p2 = scmp.ge.s32.totalorder %s19_s17, 4   ;;  %s885_s13 = smov %s695_s14 }
  0xc8   : > { %s886_s14 = smov %s790_s26  ;;  %s887_s15 = smov %s703_s16 }
  0xc9   : > { %s888_s16 = smov %s890_s20  ;;  %18 = sbr.rel (!%p16_p2) target bundleno = 6 (0x6), region = 81 }
  0xce   :  { %423 = vsyncpa [#allocation3], 1 }
  0xcf   :  { %425 = vsyncpa [#allocation3 + $0x1], 1 }
  0xd0   :  { %426 = vsyncpa [#allocation4], 1 }
  0xd1   :  { %428 = vsyncpa [#allocation4 + $0x1], 1 }

</bundles_post_ra>
